<compile_context>
chip_gen: v6e
topology: v6e:2x2x1
jax: 0.10.0
libtpu: 0.0.40
codegen_flags: <defaults>
</compile_context>

<pallas_src>
import functools
import math

import jax
import jax.numpy as jnp
from jax import lax
from jax.experimental import pallas as pl
from jax.experimental.pallas import tpu as pltpu


# dot_general dimension numbers for `x @ W.T` with W in PyTorch (out, in)
# layout: contract the last dim of both operands (no materialized transpose).
_DN_RHS_T = (((1,), (1,)), ((), ()))


def _vmem_limit_bytes():
    """Generation-aware scoped-VMEM request (per-TC budget, with headroom)."""
    try:
        cap = pltpu.get_tpu_info().vmem_capacity_bytes
    except Exception:
        cap = 64 * 1024 * 1024
    if cap <= 64 * 1024 * 1024:          # v7x-class: 64 MiB per TensorCore
        return 40 * 1024 * 1024
    return 96 * 1024 * 1024              # v5e/v6e: 128 MiB per TensorCore


def _pick_block(extent, target):
    if extent <= target:
        return extent
    for blk in (target, 256, 128, 64, 32, 16, 8):
        if blk <= target and extent % blk == 0:
            return blk
    return extent


def _kv_proj_kernel(xk_ref, xv_ref, wk_ref, bk_ref, wv_ref, bv_ref,
                    k_ref, v_ref):
    """K/V projections: y = x @ W.T + b, f32 accumulation, cdt output."""
    f32 = jnp.float32
    k = lax.dot_general(xk_ref[0], wk_ref[...], _DN_RHS_T,
                        preferred_element_type=f32) + bk_ref[...]
    v = lax.dot_general(xv_ref[0], wv_ref[...], _DN_RHS_T,
                        preferred_element_type=f32) + bv_ref[...]
    k_ref[0] = k.astype(k_ref.dtype)
    v_ref[0] = v.astype(v_ref.dtype)


def _flash_mha_kernel(xq_ref, k_ref, v_ref, maskadd_ref,
                      wq_ref, bq_ref, wo_ref, bo_ref,
                      out_ref,
                      q_sc, m_sc, l_sc, acc_sc,
                      *, num_heads, head_dim, scale):
    """Fused Q-projection + flash attention over Lk + output projection."""
    f32 = jnp.float32
    cdt = wq_ref.dtype                       # compute dtype (bf16 or f32)
    ki = pl.program_id(2)
    nk = pl.num_programs(2)

    # Per-(batch, q-block) init: project Q once (not per k-block), fold the
    # 1/sqrt(d) scale into it, reset online-softmax state.
    @pl.when(ki == 0)
    def _():
        q = lax.dot_general(xq_ref[0], wq_ref[...], _DN_RHS_T,
                            preferred_element_type=f32) + bq_ref[...]
        q_sc[...] = (q * scale).astype(cdt)
        m_sc[...] = jnp.full_like(m_sc, -jnp.inf)
        l_sc[...] = jnp.zeros_like(l_sc)
        acc_sc[...] = jnp.zeros_like(acc_sc)

    q_blk = q_sc[...]                        # (block_q, H) cdt
    k_blk = k_ref[0]                         # (block_k, H) cdt
    v_blk = v_ref[0]                         # (block_k, H) cdt

    bq_rows = q_blk.shape[0]
    bk_rows = k_blk.shape[0]
    # Hoist the additive-mask broadcast out of the head loop (no CSE of
    # broadcast_in_dim in JAX).
    neg = jnp.broadcast_to(maskadd_ref[0], (bq_rows, bk_rows))   # f32

    # TODO(synk): for num_heads >= ~8 switch to lax.fori_loop with pl.ds
    # slices (bounded live ranges), and for head_dim < 128 group heads per
    # MXU pass to fill the contraction/N dims of the 256-wide MXUs.
    for h in range(num_heads):
        lo = h * head_dim
        hi = lo + head_dim
        qh = q_blk[:, lo:hi]                 # (block_q, d)
        kh = k_blk[:, lo:hi]                 # (block_k, d)
        vh = v_blk[:, lo:hi]                 # (block_k, d)

        s = lax.dot_general(qh, kh, _DN_RHS_T,
                            preferred_element_type=f32) + neg    # (bq, bk) f32
        m_prev = m_sc[h]                                         # (bq, 1)
        m_new = jnp.maximum(m_prev, jnp.max(s, axis=-1, keepdims=True))
        alpha = jnp.exp(m_prev - m_new)
        p = jnp.exp(s - m_new)
        l_sc[h] = alpha * l_sc[h] + jnp.sum(p, axis=-1, keepdims=True)
        acc_sc[:, lo:hi] = alpha * acc_sc[:, lo:hi] + jnp.dot(
            p.astype(cdt), vh, preferred_element_type=f32)
        m_sc[h] = m_new

    # Finalize: normalize, then fused output projection straight from VMEM.
    @pl.when(ki == nk - 1)
    def _():
        for h in range(num_heads):
            lo = h * head_dim
            hi = lo + head_dim
            acc_sc[:, lo:hi] = acc_sc[:, lo:hi] * pl.reciprocal(
                l_sc[h], approx=False)
        # dropout_ratio = 0.0 -> identity (eval semantics)
        out = lax.dot_general(acc_sc[...].astype(cdt), wo_ref[...], _DN_RHS_T,
                              preferred_element_type=f32) + bo_ref[...]
        out_ref[0] = out.astype(out_ref.dtype)


def multi_head_attention(x_q, x_k, x_v, mask, params, *, num_heads,
                         compute_dtype=jnp.bfloat16,
                         block_q=None, block_k=None, block_rows=None):
    """x_q: (B, Lq, H); x_k, x_v: (B, Lk, H); mask: (B, Lk) bool (True = keep)."""
    B, Lq, H = x_q.shape
    Lk = x_k.shape[1]
    assert H % num_heads == 0
    d = H // num_heads
    f32 = jnp.float32
    cdt = compute_dtype

    block_q = _pick_block(Lq, 256) if block_q is None else block_q
    block_k = _pick_block(Lk, 512) if block_k is None else block_k
    block_rows = _pick_block(Lk, 256) if block_rows is None else block_rows
    assert Lq % block_q == 0 and Lk % block_k == 0 and Lk % block_rows == 0

    # Activations / weights in compute dtype (bf16 halves HBM<->VMEM bytes and
    # doubles MXU throughput); biases, mask, accumulation stay f32.
    xq = x_q.astype(cdt)
    xk = x_k.astype(cdt)
    xv = x_v.astype(cdt)
    wq = params["wq"].astype(cdt)            # PyTorch (out, in) layout, no .T
    wk = params["wk"].astype(cdt)
    wv = params["wv"].astype(cdt)
    wo = params["wo"].astype(cdt)
    bq = params["bq"].reshape(1, H).astype(f32)
    bk = params["bk"].reshape(1, H).astype(f32)
    bv = params["bv"].reshape(1, H).astype(f32)
    bo = params["bo"].reshape(1, H).astype(f32)

    # Additive key mask: 0 where attended, -1e9 where masked, shaped (B, 1, Lk).
    mask_add = jnp.where(mask, 0.0, -1e9).astype(f32).reshape(B, 1, Lk)

    vmem_limit = _vmem_limit_bytes()

    # ---- Kernel 1: K/V projections (once per key token, not per q-block) ----
    w1_spec = pl.BlockSpec((H, H), lambda b, i: (0, 0),
                           pipeline_mode=pl.Buffered(1))
    b1_spec = pl.BlockSpec((1, H), lambda b, i: (0, 0),
                           pipeline_mode=pl.Buffered(1))
    row_spec = pl.BlockSpec((1, block_rows, H), lambda b, i: (b, i, 0))
    k_proj, v_proj = pl.pallas_call(
        _kv_proj_kernel,
        out_shape=(jax.ShapeDtypeStruct((B, Lk, H), cdt),
                   jax.ShapeDtypeStruct((B, Lk, H), cdt)),
        grid=(B, Lk // block_rows),
        in_specs=[row_spec, row_spec, w1_spec, b1_spec, w1_spec, b1_spec],
        out_specs=(row_spec, row_spec),
        compiler_params=pltpu.CompilerParams(
            dimension_semantics=("parallel", "parallel"),
            vmem_limit_bytes=vmem_limit),
    )(xk, xv, wk, bk, wv, bv)

    # ---- Kernel 2: fused Q-proj + flash attention (Lk tiled) + out-proj ----
    nq = Lq // block_q
    nkb = Lk // block_k
    w2_spec = pl.BlockSpec((H, H), lambda b, qi, ki: (0, 0),
                           pipeline_mode=pl.Buffered(1))
    b2_spec = pl.BlockSpec((1, H), lambda b, qi, ki: (0, 0),
                           pipeline_mode=pl.Buffered(1))
    kernel = functools.partial(_flash_mha_kernel, num_heads=num_heads,
                               head_dim=d, scale=1.0 / math.sqrt(d))
    return pl.pallas_call(
        kernel,
        out_shape=jax.ShapeDtypeStruct((B, Lq, H), x_q.dtype),
        grid=(B, nq, nkb),
        in_specs=[
            pl.BlockSpec((1, block_q, H), lambda b, qi, ki: (b, qi, 0)),   # x_q
            pl.BlockSpec((1, block_k, H), lambda b, qi, ki: (b, ki, 0)),   # k
            pl.BlockSpec((1, block_k, H), lambda b, qi, ki: (b, ki, 0)),   # v
            pl.BlockSpec((1, 1, block_k), lambda b, qi, ki: (b, 0, ki)),   # mask
            w2_spec, b2_spec,                                              # wq,bq
            w2_spec, b2_spec,                                              # wo,bo
        ],
        out_specs=pl.BlockSpec((1, block_q, H), lambda b, qi, ki: (b, qi, 0)),
        scratch_shapes=[
            pltpu.VMEM((block_q, H), cdt),               # q (projected, scaled)
            pltpu.VMEM((num_heads, block_q, 1), f32),    # running max
            pltpu.VMEM((num_heads, block_q, 1), f32),    # running sum
            pltpu.VMEM((block_q, H), f32),               # output accumulator
        ],
        compiler_params=pltpu.CompilerParams(
            dimension_semantics=("parallel", "parallel", "arbitrary"),
            vmem_limit_bytes=vmem_limit),
    )(xq, k_proj, v_proj, mask_add, wq, bq, wo, bo)


def _reference(x_q, x_k, x_v, mask, params, *, num_heads):
    """Plain-JAX mirror of the PyTorch forward for verification."""
    H = x_q.shape[-1]
    d = H // num_heads
    q = x_q @ params["wq"].T + params["bq"]
    k = x_k @ params["wk"].T + params["bk"]
    v = x_v @ params["wv"].T + params["bv"]

    def split_heads(t):  # (B, L, H) -> (h*B, L, d), torch.cat(split(...), dim=0)
        return jnp.concatenate(jnp.split(t, num_heads, axis=2), axis=0)

    qh, kh, vh = split_heads(q), split_heads(k), split_heads(v)
    scores = jnp.einsum("bqd,bkd->bqk", qh, kh) / math.sqrt(d)
    inf_mask = (1.0 - mask.astype(jnp.float32))[:, None, :] * (-1e9)
    inf_mask = jnp.concatenate([inf_mask] * num_heads, axis=0)
    a = jax.nn.softmax(scores + inf_mask, axis=-1)
    out = jnp.einsum("bqk,bkd->bqd", a, vh)
    out = jnp.concatenate(jnp.split(out, num_heads, axis=0), axis=2)
    return out @ params["wo"].T + params["bo"]


def _init_params(key, hidden_dim):
    # Deterministic init mimicking nn.Linear default: U(-1/sqrt(in), 1/sqrt(in)).
    bound = 1.0 / math.sqrt(hidden_dim)
    keys = jax.random.split(key, 8)
    u = lambda k, shape: jax.random.uniform(k, shape, jnp.float32, -bound, bound)
    return {
        "wq": u(keys[0], (hidden_dim, hidden_dim)), "bq": u(keys[1], (hidden_dim,)),
        "wk": u(keys[2], (hidden_dim, hidden_dim)), "bk": u(keys[3], (hidden_dim,)),
        "wv": u(keys[4], (hidden_dim, hidden_dim)), "bv": u(keys[5], (hidden_dim,)),
        "wo": u(keys[6], (hidden_dim, hidden_dim)), "bo": u(keys[7], (hidden_dim,)),
    }


if __name__ == "__main__":
    B, Lq, Lk, H, num_heads = 2, 8, 8, 32, 4

    key = jax.random.PRNGKey(0)
    k_par, k_q, k_k, k_v = jax.random.split(key, 4)

    params = _init_params(k_par, H)
    x_q = jax.random.normal(k_q, (B, Lq, H), jnp.float32)
    x_k = jax.random.normal(k_k, (B, Lk, H), jnp.float32)
    x_v = jax.random.normal(k_v, (B, Lk, H), jnp.float32)
    # Boolean padding mask (True = attend): batch 0 full, batch 1 keeps first 5 keys.
    lengths = jnp.array([Lk, 5])
    mask = jnp.arange(Lk)[None, :] < lengths[:, None]

    ref = _reference(x_q, x_k, x_v, mask, params, num_heads=num_heads)

    # f32 compute path: should match the reference closely.
    out_f32 = multi_head_attention(x_q, x_k, x_v, mask, params,
                                   num_heads=num_heads,
                                   compute_dtype=jnp.float32)
    out_f32 = jax.block_until_ready(out_f32)
    assert out_f32.shape == (B, Lq, H)
    assert jnp.allclose(out_f32, ref, atol=1e-2, rtol=1e-2), "f32 path mismatch"

    # bf16 compute path (default): bf16 operands, f32 accumulation & softmax.
    out_bf16 = multi_head_attention(x_q, x_k, x_v, mask, params,
                                    num_heads=num_heads)
    out_bf16 = jax.block_until_ready(out_bf16)
    assert out_bf16.shape == (B, Lq, H)
    assert jnp.allclose(out_bf16, ref, atol=7e-2, rtol=7e-2), "bf16 path mismatch"

    print("KERNEL_OK")
</pallas_src>

<mosaic_0001>
module attributes {stable_mosaic.version = 11 : i64} {
  func.func @_kv_proj_kernel(%arg0: i32, %arg1: i32, %arg2: memref<1x8x32xf32, #tpu.memory_space<vmem>>, %arg3: memref<1x8x32xf32, #tpu.memory_space<vmem>>, %arg4: memref<32x32xf32, #tpu.memory_space<vmem>>, %arg5: memref<1x32xf32, #tpu.memory_space<vmem>>, %arg6: memref<32x32xf32, #tpu.memory_space<vmem>>, %arg7: memref<1x32xf32, #tpu.memory_space<vmem>>, %arg8: memref<1x8x32xf32, #tpu.memory_space<vmem>>, %arg9: memref<1x8x32xf32, #tpu.memory_space<vmem>>) attributes {dimension_semantics = [#tpu.dimension_semantics<parallel>, #tpu.dimension_semantics<parallel>], iteration_bounds = array<i64: 2, 1>, scalar_prefetch = 0 : i64, scratch_operands = 0 : i64, tpu.core_type = #tpu.core_type<tc>, window_params = [{transform_indices = @transform_0, window_bounds = array<i64: 1, 8, 32>}, {transform_indices = @transform_1, window_bounds = array<i64: 1, 8, 32>}, {pipeline_mode = #tpu.pipeline_mode<synchronous>, transform_indices = @transform_2, window_bounds = array<i64: 32, 32>}, {pipeline_mode = #tpu.pipeline_mode<synchronous>, transform_indices = @transform_3, window_bounds = array<i64: 1, 32>}, {pipeline_mode = #tpu.pipeline_mode<synchronous>, transform_indices = @transform_4, window_bounds = array<i64: 32, 32>}, {pipeline_mode = #tpu.pipeline_mode<synchronous>, transform_indices = @transform_5, window_bounds = array<i64: 1, 32>}, {transform_indices = @transform_6, window_bounds = array<i64: 1, 8, 32>}, {transform_indices = @transform_7, window_bounds = array<i64: 1, 8, 32>}]} {
    %c0 = arith.constant 0 : index
    %c0_0 = arith.constant 0 : index
    %c0_1 = arith.constant 0 : index
    %0 = vector.load %arg2[%c0, %c0_0, %c0_1] : memref<1x8x32xf32, #tpu.memory_space<vmem>>, vector<1x8x32xf32>
    %1 = vector.shape_cast %0 : vector<1x8x32xf32> to vector<8x32xf32>
    %c0_2 = arith.constant 0 : index
    %c0_3 = arith.constant 0 : index
    %2 = vector.load %arg4[%c0_2, %c0_3] : memref<32x32xf32, #tpu.memory_space<vmem>>, vector<32x32xf32>
    %cst = arith.constant dense<0.000000e+00> : vector<8x32xf32>
    %3 = tpu.matmul %1, %2, %cst {dimension_numbers = #tpu.dot_dimension_numbers<[1], [1], [0], [0], [0, 0, 1, 0], [], []>} : vector<8x32xf32>, vector<32x32xf32>, vector<8x32xf32> -> vector<8x32xf32>
    %c0_4 = arith.constant 0 : index
    %c0_5 = arith.constant 0 : index
    %4 = vector.load %arg5[%c0_4, %c0_5] : memref<1x32xf32, #tpu.memory_space<vmem>>, vector<1x32xf32>
    %5 = vector.broadcast %4 : vector<1x32xf32> to vector<8x32xf32>
    %6 = arith.addf %3, %5 : vector<8x32xf32>
    %c0_6 = arith.constant 0 : index
    %c0_7 = arith.constant 0 : index
    %c0_8 = arith.constant 0 : index
    %7 = vector.load %arg3[%c0_6, %c0_7, %c0_8] : memref<1x8x32xf32, #tpu.memory_space<vmem>>, vector<1x8x32xf32>
    %8 = vector.shape_cast %7 : vector<1x8x32xf32> to vector<8x32xf32>
    %c0_9 = arith.constant 0 : index
    %c0_10 = arith.constant 0 : index
    %9 = vector.load %arg6[%c0_9, %c0_10] : memref<32x32xf32, #tpu.memory_space<vmem>>, vector<32x32xf32>
    %cst_11 = arith.constant dense<0.000000e+00> : vector<8x32xf32>
    %10 = tpu.matmul %8, %9, %cst_11 {dimension_numbers = #tpu.dot_dimension_numbers<[1], [1], [0], [0], [0, 0, 1, 0], [], []>} : vector<8x32xf32>, vector<32x32xf32>, vector<8x32xf32> -> vector<8x32xf32>
    %c0_12 = arith.constant 0 : index
    %c0_13 = arith.constant 0 : index
    %11 = vector.load %arg7[%c0_12, %c0_13] : memref<1x32xf32, #tpu.memory_space<vmem>>, vector<1x32xf32>
    %12 = vector.broadcast %11 : vector<1x32xf32> to vector<8x32xf32>
    %13 = arith.addf %10, %12 : vector<8x32xf32>
    %c0_14 = arith.constant 0 : index
    %c0_15 = arith.constant 0 : index
    %c0_16 = arith.constant 0 : index
    %14 = vector.load %arg8[%c0_14, %c0_15, %c0_16] : memref<1x8x32xf32, #tpu.memory_space<vmem>>, vector<1x8x32xf32>
    %15 = vector.shape_cast %14 : vector<1x8x32xf32> to vector<8x32xf32>
    %16 = vector.shape_cast %6 : vector<8x32xf32> to vector<1x8x32xf32>
    tpu.vector_store %arg8[%c0_14, %c0_15, %c0_16], %16 {strides = array<i32>} : memref<1x8x32xf32, #tpu.memory_space<vmem>>, vector<1x8x32xf32>,
    %c0_17 = arith.constant 0 : index
    %c0_18 = arith.constant 0 : index
    %c0_19 = arith.constant 0 : index
    %17 = vector.load %arg9[%c0_17, %c0_18, %c0_19] : memref<1x8x32xf32, #tpu.memory_space<vmem>>, vector<1x8x32xf32>
    %18 = vector.shape_cast %17 : vector<1x8x32xf32> to vector<8x32xf32>
    %19 = vector.shape_cast %13 : vector<8x32xf32> to vector<1x8x32xf32>
    tpu.vector_store %arg9[%c0_17, %c0_18, %c0_19], %19 {strides = array<i32>} : memref<1x8x32xf32, #tpu.memory_space<vmem>>, vector<1x8x32xf32>,
    return
  }
  func.func @transform_0(%arg0: i32, %arg1: i32) -> (i32, i32, i32) {
    %c0_i32 = arith.constant 0 : i32
    %c0_i32_0 = arith.constant 0 : i32
    return %arg0, %arg1, %c0_i32 : i32, i32, i32
  }
  func.func @transform_1(%arg0: i32, %arg1: i32) -> (i32, i32, i32) {
    %c0_i32 = arith.constant 0 : i32
    %c0_i32_0 = arith.constant 0 : i32
    return %arg0, %arg1, %c0_i32 : i32, i32, i32
  }
  func.func @transform_2(%arg0: i32, %arg1: i32) -> (i32, i32) {
    %c0_i32 = arith.constant 0 : i32
    %c0_i32_0 = arith.constant 0 : i32
    %c0_i32_1 = arith.constant 0 : i32
    return %c0_i32, %c0_i32_0 : i32, i32
  }
  func.func @transform_3(%arg0: i32, %arg1: i32) -> (i32, i32) {
    %c0_i32 = arith.constant 0 : i32
    %c0_i32_0 = arith.constant 0 : i32
    %c0_i32_1 = arith.constant 0 : i32
    return %c0_i32, %c0_i32_0 : i32, i32
  }
  func.func @transform_4(%arg0: i32, %arg1: i32) -> (i32, i32) {
    %c0_i32 = arith.constant 0 : i32
    %c0_i32_0 = arith.constant 0 : i32
    %c0_i32_1 = arith.constant 0 : i32
    return %c0_i32, %c0_i32_0 : i32, i32
  }
  func.func @transform_5(%arg0: i32, %arg1: i32) -> (i32, i32) {
    %c0_i32 = arith.constant 0 : i32
    %c0_i32_0 = arith.constant 0 : i32
    %c0_i32_1 = arith.constant 0 : i32
    return %c0_i32, %c0_i32_0 : i32, i32
  }
  func.func @transform_6(%arg0: i32, %arg1: i32) -> (i32, i32, i32) {
    %c0_i32 = arith.constant 0 : i32
    %c0_i32_0 = arith.constant 0 : i32
    return %arg0, %arg1, %c0_i32 : i32, i32, i32
  }
  func.func @transform_7(%arg0: i32, %arg1: i32) -> (i32, i32, i32) {
    %c0_i32 = arith.constant 0 : i32
    %c0_i32_0 = arith.constant 0 : i32
    return %arg0, %arg1, %c0_i32 : i32, i32, i32
  }
}

</mosaic_0001>

<bundles_post_ra>
// kernel: tpu_custom_call.1
= control target key start
LH: loop header
LB: loop body
LE: loop exit
PB: predicated region body
PF: predicated region fallthrough
CT: control target
= control target key end

     0   :  { %s1488_s0 = inlined_call_operand.hbm [shape: f32[2,8,32], index: 0, kind: input, shape index: {}]   ;;  %s1489_s1 = inlined_call_operand.hbm [shape: f32[2,8,32], index: 1, kind: input, shape index: {}]   ;;  %s1490_s2 = inlined_call_operand.hbm [shape: f32[32,32], index: 2, kind: input, shape index: {}]   ;;  %s1491_s3 = inlined_call_operand.vmem [shape: f32[1,32], index: 3, kind: input, shape index: {}]   ;;  %s1492_s4 = inlined_call_operand.hbm [shape: f32[32,32], index: 4, kind: input, shape index: {}]   ;;  %s1493_s5 = inlined_call_operand.vmem [shape: f32[1,32], index: 5, kind: input, shape index: {}]   ;;  %s1494_s6 = inlined_call_operand.hbm [shape: f32[2,8,32], index: 6, kind: output, shape index: {0}]   ;;  %s1495_s7 = inlined_call_operand.hbm [shape: f32[2,8,32], index: 7, kind: output, shape index: {1}]  }
   0x1   :  { %1498 = sst [smem:[#allocation20_spill]] %s1488_s0 }
   0x2   :  { %1499 = sst [smem:[#allocation21_spill]] %s1489_s1 }
   0x3   :  { %1500 = sst [smem:[#allocation22_spill]] %s1490_s2 }
   0x4   :  { %1501 = sst [smem:[#allocation23_spill]] %s1492_s4 }
   0x5   :  { %13 = vsyncpa [#allocation3], 0 }
   0x6   :  { %15 = vsyncpa [#allocation3 + $0x1], 0 }
   0x7   :  { %16 = vsyncpa [#allocation6], 0 }
   0x8   :  { %18 = vsyncpa [#allocation6 + $0x1], 0 }
   0x9   :  { %19 = vsyncpa [#allocation9], 0 }
   0xa   :  { %20 = vsyncpa [#allocation4], 0 }
   0xb   :  { %22 = vsyncpa [#allocation4 + $0x1], 0 }
   0xc   :  { %23 = vsyncpa [#allocation12], 0 }
   0xd   :  { %25 = vsyncpa [#allocation12 + $0x1], 0  ;;  %s1226_s24 = smov 0   ;;  %s1228_s25 = smov 0  }
   0xe   :  { %s1230_s26 = smov 0   ;;  %s1232_s27 = smov 0  }
   0xf   :  { %s1234_s28 = smov 0   ;;  %s1236_s29 = smov 0  }
  0x10 LB: > { %s1257_s30 = sadd.s32 4294967295, %s1174_s29   ;;  %s781_s8 = sadd.s32 4294967294, %s1174_s29   ;;  %s1174_s29 = sphi %s1236_s29, %s31_s29   ;;  %s1170_s28 = sphi %s1234_s28, %s1525_s28   ;;  %s1166_s27 = sphi %s1232_s27, %s1524_s27   ;;  %s1162_s26 = sphi %s1230_s26, %s1523_s26   ;;  %s1158_s25 = sphi %s1228_s25, %s1522_s25   ;;  %s1154_s24 = sphi %s1226_s24, %s1521_s24  }
  0x11   : > { %p65_p0 = scmp.ne.s32.totalorder %s1158_s25, %s1154_s24  ;;  %p1496_p1 = scmp.eq.s32.totalorder %s1257_s30, 0 }
  0x12   : > { %p209_p3 = scmp.eq.s32.totalorder %s781_s8, 1  ;;  %p782_p5 = scmp.ge.s32.totalorder %s1174_s29, 1 }
  0x13   : > { %p1266_p4 = por %p1496_p1, %p65_p0  ;;  %p244_p7 = scmp.lt.s32.totalorder %s1174_s29, 3 }
  0x14   : > { %p1271_p6 = por %p209_p3, %p65_p0  ;;  %s1176_s12 = smov [#allocation7]  }
  0x15   : > { %p1276_p8 = pnand %p782_p5, %p244_p7  ;;  %s256_s13 = sshll.u32 %s1176_s12, 4  ;;  %s257_s13 = int_to_ptr.vmem [resolvable:$true] %s256_s13 }
  0x16   : > { %s1503_s10 = scalar_select %p1271_p6, 1, 0 }
  0x17   : > { %p863_p9 = pneg %p1276_p8  ;;  %s1177_s15 = smov [#allocation8]  }
  0x18   : > { %s272_s16 = sshll.u32 %s1177_s15, 4  ;;  %s955_s17 = scalar_lea.vmem %s257_s13, 512  ;;  %s273_s16 = int_to_ptr.vmem [resolvable:$true] %s272_s16 }
  0x19   : > { %p1285_p11 = pnand %p863_p9, %p1496_p1  ;;  %p956_p13 = scmp.ne.s32.totalorder %s257_s13, %s955_s17 }
  0x1a   : > { %p963_p5 = scmp.lt.s32.totalorder %s257_s13, %s257_s13  ;;  %p964_p7 = scmp.lt.s32.totalorder %s955_s17, %s955_s17 }
  0x1b   : > { %p946_p12 = pneg %p1285_p11 }
  0x1c   : > { %p965_p10 = por %p964_p7, %p963_p5 }
  0x1d   : > { %p958_p0 = pnand %p956_p13, %p946_p12 }
  0x1f   : > { %p959_p3 = pneg %p958_p0 }
  0x21   : > { %p966_p9 = pnand %p965_p10, %p959_p3 }
  0x23   : > { %969 = shalt.err (!%p966_p9)
}
  0x24   : > { %s1178_s18 = smov 128   ;;  %s1179_s19 = smov 8  }
  0x25   : > { %s1506_s2 = sld [smem:[#allocation22_spill]]  ;;  %s981_s22 = scalar_lea.vmem %s273_s16, 512 }
  0x26   : > { %p982_p1 = scmp.ne.s32.totalorder %s273_s16, %s981_s22  ;;  %p989_p2 = scmp.lt.s32.totalorder %s273_s16, %s273_s16 }
  0x27   : > { %p990_p6 = scmp.lt.s32.totalorder %s981_s22, %s981_s22 }
  0x28   : > { %p984_p13 = pnand %p982_p1, %p946_p12 }
  0x29   : > { %p991_p5 = por %p990_p6, %p989_p2 }
  0x2a   : > { %p985_p0 = pneg %p984_p13 }
  0x2b   : > { %866 = dma.hbm_to_vmem [thread:$0]  (!%p1285_p11), %s1506_s2, 512, %s257_s13, [#allocation6], %s1178_s18, %s1178_s18, %s1179_s19  }
  0x2c   : > { %p992_p10 = pnand %p991_p5, %p985_p0 }
  0x2e   : > { %995 = shalt.err (!%p992_p10)
}
  0x2f   : > { %s1507_s4 = sld [smem:[#allocation23_spill]]  ;;  %s43_s12 = sadd.s32 1, %s1170_s28 }
  0x30   : > { %s52_s13 = sadd.s32 1, %s1162_s26  ;;  %p45_p1 = scmp.ge.s32.totalorder %s43_s12, 2 }
  0x31   : > { %p59_p2 = scmp.ne.s32.totalorder %s1162_s26, %s1158_s25  ;;  %p60_p6 = scmp.eq.s32.totalorder %s1174_s29, 0 }
  0x32   : > { %p886_p12 = scmp.lt.s32.totalorder %s1174_s29, 2  ;;  %s1527_s12 = smov (%p45_p1, %s43_s12), 0 }
  0x33   : > { %1508 = sst [smem:[#allocation19_spill]] %s1527_s12  ;;  %p61_p3 = por %p60_p6, %p59_p2 }
  0x34   : > { %p1509_p7 = scmp.eq.s32.totalorder %s1257_s30, 1  ;;  %s47_s15 = ssub.s32 %s1170_s28, %s1527_s12 }
  0x35   : > { %869 = dma.hbm_to_vmem [thread:$0]  (!%p1285_p11), %s1507_s4, 512, %s273_s16, [#allocation9], %s1178_s18, %s1178_s18, %s1179_s19  }
  0x36   : > { %p1317_p9 = por %p1509_p7, %p59_p2  ;;  %s289_s17 = sand.u32 1, %s1162_s26  }
  0x37   : > { %p50_p13 = scmp.eq.s32.totalorder %s47_s15, 0  ;;  %s786_s16 = sshll.u32 %s289_s17, 3 }
  0x38   : > { %s787_s18 = sshll.u32 %s1170_s28, 7  ;;  %s1511_s0 = sld [smem:[#allocation20_spill]] }
  0x39   : > { %s1326_s19 = scalar_select %p50_p13, %s1162_s26, %s52_s13  }
  0x3a   : > { %s293_s23 = scalar_lea.vmem [#allocation2], %s786_s16  ;;  %p1333_p11 = pnand %p886_p12, %p61_p3 }
  0x3b   : > { %s301_s8 = sshll.u32 %s293_s23, 4  ;;  %s1513_s1 = sld [smem:[#allocation21_spill]]  ;;  %s302_s8 = int_to_ptr.vmem [resolvable:$true] %s301_s8 }
  0x3c   : > { %s290_s13 = scalar_lea.sflag [#allocation3], %s289_s17  ;;  %p998_p0 = pneg %p1333_p11 }
  0x3d   : > { %s1009_s20 = scalar_lea.vmem %s302_s8, 128  ;;  %s1180_s21 = smov [#allocation2]  }
  0x3e   : > { %s299_s22 = scalar_lea.hbm %s1511_s0, %s787_s18  ;;  %p1010_p5 = scmp.ne.s32.totalorder %s302_s8, %s1009_s20 }
  0x3f   : > { %s1014_s23 = sshll.u32 %s1180_s21, 4  ;;  %s1015_s23 = int_to_ptr.vmem [resolvable:$false] %s1014_s23 }
  0x40   : > { %p1012_p10 = pnand %p1010_p5, %p998_p0  ;;  %s1016_s0 = scalar_lea.vmem %s1015_s23, 256 }
  0x41   : > { %s1340_s12 = scalar_lea.hbm %s1513_s1, %s787_s18  ;;  %p1017_p2 = scmp.lt.s32.totalorder %s302_s8, %s1015_s23 }
  0x42   : > { %p1013_p1 = pneg %p1012_p10  ;;  %p1018_p6 = scmp.lt.s32.totalorder %s1016_s0, %s1009_s20 }
  0x44   : > { %p1019_p12 = por %p1018_p6, %p1017_p2 }
  0x46   : > { %p1020_p3 = pnand %p1019_p12, %p1013_p1 }
  0x48   : > { %1023 = shalt.err (!%p1020_p3)
}
  0x49   : > { %873 = dma.hbm_to_vmem [thread:$0]  (!%p1333_p11), %s299_s22, 128, %s302_s8, %s290_s13  }
  0x4a   : > { %s308_s4 = sand.u32 1, %s1174_s29   ;;  %s312_s17 = scalar_lea.vmem [#allocation5], %s786_s16 }
  0x4b   : > { %s320_s18 = sshll.u32 %s312_s17, 4  ;;  %s309_s15 = scalar_lea.sflag [#allocation6], %s308_s4  ;;  %s321_s18 = int_to_ptr.vmem [resolvable:$true] %s320_s18 }
  0x4c   : > { %s1037_s1 = scalar_lea.vmem %s321_s18, 128  ;;  %s1181_s0 = smov [#allocation5]  }
  0x4d   : > { %p1038_p7 = scmp.ne.s32.totalorder %s321_s18, %s1037_s1  ;;  %s1042_s20 = sshll.u32 %s1181_s0, 4  ;;  %s1043_s20 = int_to_ptr.vmem [resolvable:$false] %s1042_s20 }
  0x4e   : > { %s1044_s21 = scalar_lea.vmem %s1043_s20, 256  ;;  %p1045_p10 = scmp.lt.s32.totalorder %s321_s18, %s1043_s20 }
  0x4f   : > { %p1040_p13 = pnand %p1038_p7, %p998_p0  ;;  %p1046_p1 = scmp.lt.s32.totalorder %s1044_s21, %s1037_s1 }
  0x51   : > { %p1041_p5 = pneg %p1040_p13  ;;  %p1047_p2 = por %p1046_p1, %p1045_p10 }
  0x53   : > { %p1048_p6 = pnand %p1047_p2, %p1041_p5 }
  0x55   : > { %1051 = shalt.err (!%p1048_p6)
}
  0x56   : > { %876 = dma.hbm_to_vmem [thread:$0]  (!%p1333_p11), %s1340_s12, 128, %s321_s18, %s309_s15  }
  0x57   : > { %329 = sbr.rel (%p1276_p8) target bundleno = 350 (0x15e), region = 44  ;;  %s1359_s16 = sand.u32 (!%p1276_p8), 1, %s1158_s25  }
  0x58   : > { %s1362_s22 = sshll.u32 (!%p1276_p8), %s1359_s16, 3  ;;  %s332_s1 = scalar_lea.sflag (!%p1276_p8), [#allocation3], %s1359_s16 }
  0x59   : > { %s335_s8 = scalar_lea.vmem (!%p1276_p8), [#allocation2], %s1362_s22 }
  0x5c   : > { %1129 = dma.done.wait (%p1266_p4), %s332_s1, 128  }
  0x5d   : > { %1131 = vsyncadd (%p1266_p4), %s332_s1, 4294967168  ;;  %s340_s2 = sand.u32 1, %s1257_s30   ;;  %s344_s12 = scalar_lea.vmem [#allocation5], %s1362_s22 }
  0x5e   : > { %s341_s11 = scalar_lea.sflag [#allocation6], %s340_s2 }
  0x5f   : > { %1133 = dma.done.wait (%p1266_p4), %s341_s11, 128  }
  0x60   : > { %1135 = vsyncadd (%p1266_p4), %s341_s11, 4294967168  ;;  %p1514_p8 = scmp.eq.s32.totalorder %s1257_s30, 0 }
  0x62   : > { %1137 = dma.done.wait (%p1514_p8), [#allocation6], 512   ;;  %p1515_p11 = pmov %p1514_p8 }
  0x63   : > { %p1516_p0 = pmov %p1514_p8 }
  0x64   : > { %1139 = vsyncadd (%p1515_p11), [#allocation6], 4294966784 }
  0x65   : > { %1141 = dma.done.wait (%p1516_p0), [#allocation9], 512   ;;  %p1517_p12 = pmov %p1516_p0 }
  0x66   : > { %v1182_v0 = vmov 0.0   ;;  %vm1183_vm0 = vmmov 0   ;;  %vm405_vm1 = vcmask 261120   ;;  %v397_v1 = vld [vmem:[#allocation7 + $0x18] sm:$0xff]  ;;  %v396_v3 = vld [vmem:[#allocation7 + $0x10] sm:$0xff]  ;;  %v395_v5 = vld [vmem:[#allocation7 + $0x8] sm:$0xff] }
  0x67   : > { %1143 = vsyncadd (%p1517_p12), [#allocation9], 4294966784  ;;  %825 = vmatprep.subr.mxu0 %v1182_v0  ;;  %836 = vmatprep.subr.mxu1 %v1182_v0  ;;  %v495_v2 = vld [vmem:[#allocation8 + $0x18] sm:$0xff]  ;;  %v494_v4 = vld [vmem:[#allocation8 + $0x10] sm:$0xff]  ;;  %s811_s30 = sshll.u32 %s1166_s27, 7  ;;  %s385_s17 = scalar_lea.vmem [#allocation10], %s1362_s22 }
  0x68   : > { %833 = vmatprep.mubr.msk.f32.mxu0 %vm1183_vm0, %v1182_v0  ;;  %844 = vmatprep.mubr.msk.f32.mxu1 %vm1183_vm0, %v1182_v0  ;;  %v493_v6 = vld [vmem:[#allocation8 + $0x8] sm:$0xff]  ;;  %v394_v7 = vld [vmem:[#allocation7] sm:$0xff]  ;;  %v491_v10 = vld [vmem:[%s344_s12] sm:$0xff]  ;;  %s610_s18 = sshll.u32 %s385_s17, 4  ;;  %s392_s15 = scalar_lea.vmem [#allocation11], %s1362_s22  ;;  %s1412_s18 = int_to_ptr.vmem [resolvable:$true] %s610_s18 }
  0x69   : > { %826 = vmatpush3.xpose.msk.msra.mxu0 %vm405_vm1, %v397_v1  ;;  %837 = vmatpush3.xpose.msk.msra.mxu1 %vm405_vm1, %v495_v2  ;;  %v492_v8 = vld [vmem:[#allocation8] sm:$0xff]  ;;  %s624_s0 = sshll.u32 %s392_s15, 4  ;;  %s1410_s27 = scalar_lea.hbm %s1494_s6, %s811_s30  ;;  %s1419_s0 = int_to_ptr.vmem [resolvable:$true] %s624_s0 }
  0x6a   : > { %827 = vmatprep.subr.mxu0 %v1182_v0  ;;  %838 = vmatprep.subr.mxu1 %v1182_v0  ;;  %v393_v9 = vld [vmem:[%s335_s8] sm:$0xff]  ;;  %s1417_s8 = scalar_lea.hbm %s1495_s7, %s811_s30  ;;  %s591_s2 = scalar_lea.sflag [#allocation4], %s1359_s16 }
  0x6b   : > { %v797_v11 = vld [vmem:[%s1491_s3] ss:$0 sm:$0xff]  ;;  %s1052_s11 = scalar_lea.vmem %s1412_s18, 128  ;;  %s1184_s12 = smov [#allocation10]  }
  0x6c   : > { %v803_v12 = vld [vmem:[%s1493_s5] ss:$0 sm:$0xff]  ;;  %p1053_p4 = scmp.ne.s32.totalorder %s1412_s18, %s1052_s11  ;;  %s1056_s9 = sshll.u32 %s1184_s12, 4  ;;  %s1057_s9 = int_to_ptr.vmem [resolvable:$false] %s1056_s9 }
  0x6d   : > { %828 = vmatpush3.xpose.msk.msra.mxu0 %vm405_vm1, %v396_v3  ;;  %839 = vmatpush3.xpose.msk.msra.mxu1 %vm405_vm1, %v494_v4  ;;  %s1058_s13 = scalar_lea.vmem %s1057_s9, 256  ;;  %p1059_p13 = scmp.lt.s32.totalorder %s1412_s18, %s1057_s9 }
  0x6e   : > { %829 = vmatprep.subr.mxu0 %v1182_v0  ;;  %840 = vmatprep.subr.mxu1 %v1182_v0  ;;  %p1054_p3 = pnand %p1053_p4, %p1317_p9  ;;  %p1060_p5 = scmp.lt.s32.totalorder %s1058_s13, %s1052_s11 }
  0x70   : > { %p1055_p7 = pneg %p1054_p3  ;;  %p1061_p10 = por %p1060_p5, %p1059_p13 }
  0x71   : > { %830 = vmatpush3.xpose.msk.msra.mxu0 %vm405_vm1, %v395_v5  ;;  %841 = vmatpush3.xpose.msk.msra.mxu1 %vm405_vm1, %v493_v6 }
  0x72   : > { %831 = vmatprep.subr.mxu0 %v1182_v0  ;;  %842 = vmatprep.subr.mxu1 %v1182_v0  ;;  %p1062_p1 = pnand %p1061_p10, %p1055_p7 }
  0x75   : > { %832 = vmatpush3.xpose.msk.msra.mxu0 %vm405_vm1, %v394_v7  ;;  %843 = vmatpush3.xpose.msk.msra.mxu1 %vm405_vm1, %v492_v8 }
  0x78   : > { %834 = vmatmul.mubr.msk.f32.vlgmr.msra.gmra.mxu0 %vm405_vm1, %v393_v9  ;;  %845 = vmatmul.mubr.msk.f32.vlgmr.msra.gmra.mxu1 %vm405_vm1, %v491_v10 }
 0x138   : > { %v487_v13 = vpop.f32.mrf.mxu0  ;;  %v584_v14 = vpop.f32.mrf.mxu1 }
 0x139   : > { %v488_v15 = vadd.f32 %v797_v11, %v487_v13  ;;  %v585_v16 = vadd.f32 %v803_v12, %v584_v14 }
 0x13a   : > { %v835_v17 = vpop.f32.mrf.mxu0  ;;  %v846_v18 = vpop.f32.mrf.mxu1 }
 0x13b   : > { %588 = vst.msk [vmem:[%s385_s17] sm:$0xff] %vm405_vm1, %v488_v15  ;;  %589 = vst.msk [vmem:[%s392_s15] sm:$0xff] %vm405_vm1, %v585_v16 }
 0x13c   : > { %1065 = shalt.err (!%p1062_p1)
}
 0x13d   : > { %s1066_s30 = scalar_lea.hbm %s1410_s27, 128  ;;  %s1070_s17 = scalar_lea.hbm %s1494_s6, 256 }
 0x13e   : > { %p1067_p2 = scmp.ne.s32.totalorder %s1410_s27, %s1066_s30  ;;  %p1071_p11 = scmp.lt.s32.totalorder %s1410_s27, %s1494_s6 }
 0x13f   : > { %p1072_p0 = scmp.lt.s32.totalorder %s1070_s17, %s1066_s30 }
 0x140   : > { %p1068_p6 = pnand %p1067_p2, %p1317_p9 }
 0x141   : > { %p1073_p12 = por %p1072_p0, %p1071_p11 }
 0x142   : > { %p1069_p8 = pneg %p1068_p6 }
 0x144   : > { %p1074_p4 = pnand %p1073_p12, %p1069_p8 }
 0x146   : > { %1077 = shalt.err (!%p1074_p4)
}
 0x147   : > { %859 = dma.vmem_to_hbm [thread:$0]  (%p1317_p9), %s1412_s18, 128, %s1410_s27, %s591_s2  }
 0x148   : > { %s596_s21 = scalar_lea.sflag [#allocation12], %s1359_s16  ;;  %s1078_s1 = scalar_lea.vmem %s1419_s0, 128 }
 0x149   : > { %p1079_p3 = scmp.ne.s32.totalorder %s1419_s0, %s1078_s1  ;;  %s1185_s22 = smov [#allocation11]  }
 0x14a   : > { %s1082_s11 = sshll.u32 %s1185_s22, 4  ;;  %s1083_s11 = int_to_ptr.vmem [resolvable:$false] %s1082_s11 }
 0x14b   : > { %p1080_p7 = pnand %p1079_p3, %p1317_p9  ;;  %s1084_s12 = scalar_lea.vmem %s1083_s11, 256 }
 0x14c   : > { %p1085_p5 = scmp.lt.s32.totalorder %s1419_s0, %s1083_s11  ;;  %p1086_p10 = scmp.lt.s32.totalorder %s1084_s12, %s1078_s1 }
 0x14d   : > { %p1081_p13 = pneg %p1080_p7 }
 0x14e   : > { %p1087_p1 = por %p1086_p10, %p1085_p5 }
 0x150   : > { %p1088_p2 = pnand %p1087_p1, %p1081_p13 }
 0x152   : > { %1091 = shalt.err (!%p1088_p2)
}
 0x153   : > { %s1092_s18 = scalar_lea.hbm %s1417_s8, 128  ;;  %s1096_s2 = scalar_lea.hbm %s1495_s7, 256 }
 0x154   : > { %p1093_p6 = scmp.ne.s32.totalorder %s1417_s8, %s1092_s18  ;;  %p1097_p0 = scmp.lt.s32.totalorder %s1417_s8, %s1495_s7 }
 0x155   : > { %p1098_p12 = scmp.lt.s32.totalorder %s1096_s2, %s1092_s18 }
 0x156   : > { %p1094_p8 = pnand %p1093_p6, %p1317_p9 }
 0x157   : > { %p1099_p4 = por %p1098_p12, %p1097_p0 }
 0x158   : > { %p1095_p11 = pneg %p1094_p8 }
 0x15a   : > { %p1100_p3 = pnand %p1099_p4, %p1095_p11 }
 0x15c   : > { %1103 = shalt.err (!%p1100_p3)
}
 0x15d   : > { %860 = dma.vmem_to_hbm [thread:$0]  (%p1317_p9), %s1419_s0, 128, %s1417_s8, %s596_s21  }
 0x15e PF: > { %s636_s30 = sand.u32 1, %s1154_s24   ;;  %p1518_p7 = scmp.ne.s32.totalorder %s1503_s10, 0 }
 0x15f   : > { %p1519_p13 = scmp.ge.s32.totalorder %s1174_s29, 2  ;;  %s637_s23 = scalar_lea.sflag [#allocation4], %s636_s30 }
 0x161   : > { %p878_p5 = pnand %p1519_p13, %p1518_p7 }
 0x163   : > { %p879_p10 = pneg %p878_p5 }
 0x165   : > { %1145 = dma.done.wait (%p879_p10), %s637_s23, 128  }
 0x166   : > { %1147 = vsyncadd (%p879_p10), %s637_s23, 4294967168  ;;  %s646_s4 = scalar_lea.sflag [#allocation12], %s636_s30 }
 0x167   : > { %1149 = dma.done.wait (%p879_p10), %s646_s4, 128  }
 0x168   : > { %1151 = vsyncadd (%p879_p10), %s646_s4, 4294967168  ;;  %s31_s29 = sadd.s32 1, %s1174_s29   ;;  %s1520_s14 = sld [smem:[#allocation19_spill]] }
 0x169   : > { %p28_p1 = scmp.ge.s32.totalorder %s31_s29, 4   ;;  %s1521_s24 = smov %s1158_s25 }
 0x16a   : > { %s1522_s25 = smov %s1162_s26  ;;  %s1523_s26 = smov %s1326_s19 }
 0x16b   : > { %s1524_s27 = smov %s1170_s28  ;;  %30 = sbr.rel (!%p28_p1) target bundleno = 16 (0x10), region = 127 }
 0x16e   : > { %s1525_s28 = smov %s1520_s14 }
 0x170   :  { %651 = vsyncpa [#allocation3], 1 }
 0x171   :  { %653 = vsyncpa [#allocation3 + $0x1], 1 }
 0x172   :  { %654 = vsyncpa [#allocation6], 1 }
 0x173   :  { %656 = vsyncpa [#allocation6 + $0x1], 1 }
 0x174   :  { %657 = vsyncpa [#allocation9], 1 }
 0x175   :  { %658 = vsyncpa [#allocation4], 1 }
 0x176   :  { %660 = vsyncpa [#allocation4 + $0x1], 1 }
 0x177   :  { %661 = vsyncpa [#allocation12], 1 }
 0x178   :  { %663 = vsyncpa [#allocation12 + $0x1], 1 }

</bundles_post_ra>
